<compile_context>
chip_gen: v7x
topology: tpu7x:2x2x1
jax: 0.10.0
libtpu: 0.0.40
codegen_flags: <defaults>
</compile_context>

<pallas_src>
import jax
import jax.numpy as jnp
from jax.experimental import pallas as pl
from jax.experimental.pallas import tpu as pltpu


_N_INFLIGHT = 3                        # max in-flight DMAs (HBM->HBM path)
_DMA_CHUNK_BYTES = 16 * 1024 * 1024    # per-chunk DMA size (HBM->HBM path)
_VMEM_TILE_BYTES = 4 * 1024 * 1024     # per-tile size (VMEM-bounce path)


def _lane_dense_2d(x: jax.Array) -> jax.Array:
    """Reshape x (contiguous, size > 0) to a lane-dense (rows, cols) 2D view."""
    total = x.size
    for cand in (8192, 4096, 2048, 1024, 512, 256, 128):
        if total % cand == 0:
            return x.reshape(total // cand, cand)
    # Ragged: one contiguous row. Only the DMA copy path consumes this shape
    # (the DMA engine copies bytes; vreg lane width is irrelevant there).
    return x.reshape(1, total)


# ----------------------------------------------------------------------------
# Primary materialize path: chunked HBM->HBM DMA copy (no VMEM bounce).
# ----------------------------------------------------------------------------
def _dma_copy_pallas(x2: jax.Array) -> jax.Array:
    rows, cols = x2.shape
    itemsize = x2.dtype.itemsize
    row_bytes = cols * itemsize

    chunk_rows = max(1, _DMA_CHUNK_BYTES // row_bytes)
    chunks = [(r, min(chunk_rows, rows - r)) for r in range(0, rows, chunk_rows)]
    n_chunks = len(chunks)
    n_inflight = min(_N_INFLIGHT, n_chunks)

    def kernel(x_hbm, o_hbm, sems):
        def dma(idx):
            start, size = chunks[idx]           # static Python ints
            return pltpu.make_async_copy(
                x_hbm.at[pl.ds(start, size), :],
                o_hbm.at[pl.ds(start, size), :],
                sems.at[idx % n_inflight],
            )

        # Prime the pipeline with up to n_inflight outstanding DMAs.
        for c in range(n_inflight):
            dma(c).start()
        # Steady state: wait on chunk c, then reuse its semaphore slot for
        # chunk c + n_inflight.
        for c in range(n_chunks):
            dma(c).wait()
            nxt = c + n_inflight
            if nxt < n_chunks:
                dma(nxt).start()

    return pl.pallas_call(
        kernel,
        out_shape=jax.ShapeDtypeStruct((rows, cols), x2.dtype),
        grid_spec=pltpu.PrefetchScalarGridSpec(
            num_scalar_prefetch=0,
            grid=(1,),
            in_specs=[pl.BlockSpec(memory_space=pl.ANY)],
            out_specs=pl.BlockSpec(memory_space=pl.ANY),
            scratch_shapes=[pltpu.SemaphoreType.DMA((n_inflight,))],
        ),
        cost_estimate=pl.CostEstimate(
            flops=0,
            transcendentals=0,
            bytes_accessed=2 * rows * cols * itemsize,
        ),
        compiler_params=pltpu.CompilerParams(
            dimension_semantics=("arbitrary",),
        ),
    )(x2)


# ----------------------------------------------------------------------------
# Secondary path: tiled identity copy through VMEM (kept as reference).
# ----------------------------------------------------------------------------
def _identity_kernel(x_ref, o_ref):
    o_ref[...] = x_ref[...]


def _vmem_copy_pallas(x2: jax.Array) -> jax.Array:
    rows, cols = x2.shape
    itemsize = x2.dtype.itemsize
    assert cols % 128 == 0, "VMEM copy path requires lane-dense columns"

    # dtype-native sublane multiple: 8 (f32) / 16 (bf16) / 32 (int8, fp8).
    sub = max(8, 32 // itemsize)

    rows_per_tile = max(1, _VMEM_TILE_BYTES // (cols * itemsize))
    rows_per_tile = max(sub, (rows_per_tile // sub) * sub)
    tile_rows = min(rows, rows_per_tile)

    # v7x has 2 TensorCores: avoid collapsing a *large* input to a single
    # grid step (tiny inputs still use one full-array block).
    if rows * cols * itemsize > (8 << 20) and tile_rows >= rows:
        tile_rows = max(sub, ((rows // 2) // sub) * sub)

    grid = (pl.cdiv(rows, tile_rows),)

    return pl.pallas_call(
        _identity_kernel,
        out_shape=jax.ShapeDtypeStruct((rows, cols), x2.dtype),
        grid_spec=pltpu.PrefetchScalarGridSpec(
            num_scalar_prefetch=0,
            grid=grid,
            in_specs=[pl.BlockSpec((tile_rows, cols), lambda i: (i, 0))],
            out_specs=pl.BlockSpec((tile_rows, cols), lambda i: (i, 0)),
        ),
        cost_estimate=pl.CostEstimate(
            flops=0,
            transcendentals=0,
            bytes_accessed=2 * rows * cols * itemsize,
        ),
        compiler_params=pltpu.CompilerParams(
            dimension_semantics=("parallel",),
            vmem_limit_bytes=32 * 1024 * 1024,
        ),
    )(x2)


# ----------------------------------------------------------------------------
# PrintLayer.forward
# ----------------------------------------------------------------------------
def print_layer(x: jax.Array, materialize: bool = False) -> jax.Array:
    """Pallas implementation of PrintLayer.forward: print shape, return x.

    materialize=False (default): pure identity — no kernel launch, no HBM
    traffic.  materialize=True: produce a physically distinct copy via a
    chunked HBM->HBM DMA Pallas kernel.
    """
    # `print(x.shape)` — shapes are static in JAX, so a host print is exact in
    # eager mode.
    # TODO(synk): under jax.jit this prints once per trace, not per call; use
    # jax.debug.print for strict per-execution printing if that matters.
    print(tuple(x.shape))

    if not materialize:
        return x
    if x.size == 0:
        return x  # nothing to copy

    x2 = _lane_dense_2d(x)
    out2 = _dma_copy_pallas(x2)
    return out2.reshape(x.shape)


if __name__ == "__main__":
    key = jax.random.PRNGKey(0)
    # Small NCHW input consistent with a DCGAN feature map.
    x = jax.random.normal(key, (2, 4, 16, 16), dtype=jnp.float32)

    # Production path: pure identity (no kernel).
    y_fast = print_layer(x)

    # Primary materialize path: chunked HBM->HBM DMA copy kernel.
    y_dma = jax.block_until_ready(print_layer(x, materialize=True))

    # Secondary path: tiled VMEM-bounce copy kernel, exercised once.
    x2 = _lane_dense_2d(x)
    y_vmem = jax.block_until_ready(_vmem_copy_pallas(x2)).reshape(x.shape)

    assert y_fast.shape == x.shape and y_fast.dtype == x.dtype
    assert y_dma.shape == x.shape and y_dma.dtype == x.dtype
    assert y_vmem.shape == x.shape and y_vmem.dtype == x.dtype
    assert bool(jnp.all(y_fast == x))
    assert bool(jnp.all(y_dma == x))
    assert bool(jnp.all(y_vmem == x))

    print("KERNEL_OK")
</pallas_src>

<mosaic_0001>
module attributes {stable_mosaic.version = 11 : i64} {
  func.func @kernel(%arg0: i32, %arg1: memref<1x2048xf32, #tpu.memory_space<any>>, %arg2: memref<1x2048xf32, #tpu.memory_space<any>>, %arg3: memref<1x!tpu.dma_semaphore, #tpu.memory_space<semaphore_mem>>) attributes {dimension_semantics = [#tpu.dimension_semantics<arbitrary>], iteration_bounds = array<i64: 1>, scalar_prefetch = 0 : i64, scratch_operands = 1 : i64, tpu.core_type = #tpu.core_type<tc>, window_params = [{}, {}]} {
    %c0_i32 = arith.constant 0 : i32
    %c0_i32_0 = arith.constant 0 : i32
    %c0_i32_1 = arith.constant 0 : i32
    %0 = tpu.memref_slice %arg1[%c0_i32_0, %c0_i32_1] : memref<1x2048xf32, #tpu.memory_space<any>> -> memref<1x2048xf32, #tpu.memory_space<any>>
    %c0_i32_2 = arith.constant 0 : i32
    %c0_i32_3 = arith.constant 0 : i32
    %1 = tpu.memref_slice %arg2[%c0_i32_2, %c0_i32_3] : memref<1x2048xf32, #tpu.memory_space<any>> -> memref<1x2048xf32, #tpu.memory_space<any>>
    %2 = tpu.memref_slice %arg3[%c0_i32] : memref<1x!tpu.dma_semaphore, #tpu.memory_space<semaphore_mem>> -> memref<1x!tpu.dma_semaphore, #tpu.memory_space<semaphore_mem>>
    %3 = tpu.memref_squeeze %2 : memref<1x!tpu.dma_semaphore, #tpu.memory_space<semaphore_mem>> -> memref<!tpu.dma_semaphore, #tpu.memory_space<semaphore_mem>>
    tpu.enqueue_dma source(%0 : memref<1x2048xf32, #tpu.memory_space<any>>) target(%1 : memref<1x2048xf32, #tpu.memory_space<any>>) target_semaphore(%3 : memref<!tpu.dma_semaphore, #tpu.memory_space<semaphore_mem>>)
    %c0_i32_4 = arith.constant 0 : i32
    %c0_i32_5 = arith.constant 0 : i32
    %c0_i32_6 = arith.constant 0 : i32
    %4 = tpu.memref_slice %arg1[%c0_i32_5, %c0_i32_6] : memref<1x2048xf32, #tpu.memory_space<any>> -> memref<1x2048xf32, #tpu.memory_space<any>>
    %c0_i32_7 = arith.constant 0 : i32
    %c0_i32_8 = arith.constant 0 : i32
    %5 = tpu.memref_slice %arg2[%c0_i32_7, %c0_i32_8] : memref<1x2048xf32, #tpu.memory_space<any>> -> memref<1x2048xf32, #tpu.memory_space<any>>
    %6 = tpu.memref_slice %arg3[%c0_i32_4] : memref<1x!tpu.dma_semaphore, #tpu.memory_space<semaphore_mem>> -> memref<1x!tpu.dma_semaphore, #tpu.memory_space<semaphore_mem>>
    %7 = tpu.memref_squeeze %6 : memref<1x!tpu.dma_semaphore, #tpu.memory_space<semaphore_mem>> -> memref<!tpu.dma_semaphore, #tpu.memory_space<semaphore_mem>>
    tpu.wait_dma2 semaphore(%7 : memref<!tpu.dma_semaphore, #tpu.memory_space<semaphore_mem>>) src(%4 : memref<1x2048xf32, #tpu.memory_space<any>>) dst(%5 : memref<1x2048xf32, #tpu.memory_space<any>>)
    return
  }
}

</mosaic_0001>

<bundles_post_ra>
// kernel: tpu_custom_call.1
= control target key start
LH: loop header
LB: loop body
LE: loop exit
PB: predicated region body
PF: predicated region fallthrough
CT: control target
= control target key end

     0   :  { %s34_s6 = smov [#allocation2]   ;;  %s35_s7 = smov [#allocation3]   ;;  %s53_s0 = inlined_call_operand.hbm [shape: f32[1,2048], index: 0, kind: input, shape index: {}]   ;;  %s54_s1 = inlined_call_operand.hbm [shape: f32[1,2048], index: 1, kind: output, shape index: {}]  }
   0x1   :  { %s36_s8 = smov 0  }
   0x2   :  { %18 = dma.general %s53_s0, 256, %s54_s1, %s34_s6, %s35_s7, [#allocation4], %s36_s8, 0  }
   0x3   :  { %32 = dma.done.wait [#allocation2], 256 }
   0x4   :  { %33 = vsyncadd [#allocation2], 4294967040 }
   0x5   :  { %22 = vsyncmov [#allocation2] }
   0x8   :  { %s23_s13 = vpop.sfrf %22 }
   0x9   :  { %p28_p0 = scmp.ne.s32.totalorder %s23_s13, 0 }
   0xb   :  { %27 = shalt.err (%p28_p0)  }

</bundles_post_ra>
